<compile_context>
chip_gen: v7x
topology: tpu7x:2x2x1
jax: 0.10.0
libtpu: 0.0.40
codegen_flags: <defaults>
</compile_context>

<pallas_src>
import jax
import jax.numpy as jnp
from jax.experimental import pallas as pl
from jax.experimental.pallas import tpu as pltpu

BN_EPS = 1e-5


# ---------------------------------------------------------------------------
# Fused attention-gate kernel.
# ---------------------------------------------------------------------------
def _attention_gate_kernel(g_ref, x_ref, wg_ref, wx_ref, shift_ref, wp_ref,
                           psi_shift_ref, o_ref):
  """out = x * sigmoid(BN(conv1x1(relu(BN(conv1x1(g)) + BN(conv1x1(x))))))."""
  x = x_ref[...]                                          # (F_l, THW) f32
  # Branch 1x1 convs (+ folded BN scale) on the MXU: bf16 operands, f32 acc.
  acc = jnp.dot(wg_ref[...], g_ref[...].astype(jnp.bfloat16),
                preferred_element_type=jnp.float32)       # (F_int, THW)
  acc = acc + jnp.dot(wx_ref[...], x.astype(jnp.bfloat16),
                      preferred_element_type=jnp.float32)
  psi0 = jnp.maximum(acc + shift_ref[...], 0.0)           # relu(g1 + x1)
  # F_int -> 1 projection as VPU multiply + sublane reduce, then BN + sigmoid.
  s = jnp.sum(psi0 * wp_ref[...], axis=0, keepdims=True)  # (1, THW)
  psi = jax.nn.sigmoid(s + psi_shift_ref[0])
  # Gate x in-register and do the single store.
  o_ref[...] = (x * psi).astype(o_ref.dtype)


# ---------------------------------------------------------------------------
# Parameter folding (host side, once): conv bias + eval-mode BN -> weights.
# ---------------------------------------------------------------------------
def _bn_scale_shift(q):
  scale = q["gamma"] / jnp.sqrt(q["var"] + BN_EPS)
  shift = (q["b"] - q["mean"]) * scale + q["beta"]
  return scale, shift


def _fold_attention_params(p):
  sg, shg = _bn_scale_shift(p["g"])
  sx, shx = _bn_scale_shift(p["x"])
  sp, shp = _bn_scale_shift(p["psi"])
  wg_t = (p["g"]["w"] * sg[None, :]).T.astype(jnp.bfloat16)     # (F_int, F_g)
  wx_t = (p["x"]["w"] * sx[None, :]).T.astype(jnp.bfloat16)     # (F_int, F_l)
  f_int = wg_t.shape[0]
  shift_gx = (shg + shx).reshape(f_int, 1).astype(jnp.float32)  # (F_int, 1)
  wp = (p["psi"]["w"] * sp[None, :]).reshape(f_int, 1).astype(jnp.float32)
  psi_shift = shp.reshape(1).astype(jnp.float32)                # scalar (SMEM)
  return wg_t, wx_t, shift_gx, wp, psi_shift


def _pick_spatial_tile(hw):
  # Lane-dim tile: full extent when not 128-aligned (always legal); otherwise
  # cap at 512 lanes to bound VMEM while keeping lane-dense stores.
  if hw % 128 != 0:
    return hw
  return min(hw, 512)


# ---------------------------------------------------------------------------
# Public forward: matches Attention_block.forward(g, x) with NCHW tensors.
# ---------------------------------------------------------------------------
def attention_block(params, g_nchw, x_nchw):
  n, f_g, h, w = g_nchw.shape
  nx, f_l, hx, wx_sp = x_nchw.shape
  assert (n, h, w) == (nx, hx, wx_sp), "g and x must share batch/spatial dims"
  hw = h * w

  wg_t, wx_t, shift_gx, wp, psi_shift = _fold_attention_params(params)
  f_int = wg_t.shape[0]

  g3 = g_nchw.reshape(n, f_g, hw)   # free reshapes, data stays NCHW in HBM
  x3 = x_nchw.reshape(n, f_l, hw)

  thw = _pick_spatial_tile(hw)
  grid = (n, pl.cdiv(hw, thw))

  out = pl.pallas_call(
      _attention_gate_kernel,
      out_shape=jax.ShapeDtypeStruct((n, f_l, hw), x_nchw.dtype),
      grid=grid,
      in_specs=[
          pl.BlockSpec((None, f_g, thw), lambda b, j: (b, 0, j)),
          pl.BlockSpec((None, f_l, thw), lambda b, j: (b, 0, j)),
          pl.BlockSpec((f_int, f_g), lambda b, j: (0, 0)),
          pl.BlockSpec((f_int, f_l), lambda b, j: (0, 0)),
          pl.BlockSpec((f_int, 1), lambda b, j: (0, 0)),
          pl.BlockSpec((f_int, 1), lambda b, j: (0, 0)),
          pl.BlockSpec(memory_space=pltpu.MemorySpace.SMEM),
      ],
      out_specs=pl.BlockSpec((None, f_l, thw), lambda b, j: (b, 0, j)),
      compiler_params=pltpu.CompilerParams(
          dimension_semantics=("parallel", "parallel")),
  )(g3, x3, wg_t, wx_t, shift_gx, wp, psi_shift)
  return out.reshape(n, f_l, h, w)


# ---------------------------------------------------------------------------
# Deterministic synthetic parameters (shapes from the module __init__).
# ---------------------------------------------------------------------------
def _init_conv_bn(key, cin, cout):
  ks = jax.random.split(key, 6)
  return {
      "w": jax.random.normal(ks[0], (cin, cout), jnp.float32)
           / jnp.sqrt(float(cin)),
      "b": 0.01 * jax.random.normal(ks[1], (cout,), jnp.float32),
      "gamma": 1.0 + 0.1 * jax.random.normal(ks[2], (cout,), jnp.float32),
      "beta": 0.1 * jax.random.normal(ks[3], (cout,), jnp.float32),
      "mean": 0.01 * jax.random.normal(ks[4], (cout,), jnp.float32),
      "var": jnp.abs(1.0 + 0.1 * jax.random.normal(ks[5], (cout,), jnp.float32)),
  }


def init_attention_block(key, f_g, f_l, f_int):
  kg, kx, kp = jax.random.split(key, 3)
  return {"g": _init_conv_bn(kg, f_g, f_int),
          "x": _init_conv_bn(kx, f_l, f_int),
          "psi": _init_conv_bn(kp, f_int, 1)}


# ---------------------------------------------------------------------------
# Pure-jnp reference (mirrors the PyTorch module, eval-mode BN).
# ---------------------------------------------------------------------------
def attention_block_reference(params, g_nchw, x_nchw):
  def conv1x1_bn(q, t):
    y = jnp.einsum("nchw,cd->ndhw", t, q["w"]) + q["b"][None, :, None, None]
    inv = q["gamma"] / jnp.sqrt(q["var"] + BN_EPS)
    return ((y - q["mean"][None, :, None, None]) * inv[None, :, None, None]
            + q["beta"][None, :, None, None])
  g1 = conv1x1_bn(params["g"], g_nchw)
  x1 = conv1x1_bn(params["x"], x_nchw)
  psi = jax.nn.relu(g1 + x1)
  psi = jax.nn.sigmoid(conv1x1_bn(params["psi"], psi))
  return x_nchw * psi


if __name__ == "__main__":
  key = jax.random.PRNGKey(0)
  pkey, gkey, xkey = jax.random.split(key, 3)

  # Shapes as the module implies (e.g. the Att2 gate of Attention U-Net).
  f_g, f_l, f_int = 64, 64, 32
  batch, height, width = 2, 16, 16
  params = init_attention_block(pkey, f_g, f_l, f_int)
  g = jax.random.normal(gkey, (batch, f_g, height, width), jnp.float32)
  x = jax.random.normal(xkey, (batch, f_l, height, width), jnp.float32)

  fwd = jax.jit(attention_block)
  out = fwd(params, g, x)
  jax.block_until_ready(out)

  ref = attention_block_reference(params, g, x)
  max_err = float(jnp.max(jnp.abs(out - ref)))

  assert out.shape == (batch, f_l, height, width), out.shape
  assert out.dtype == jnp.float32
  assert bool(jnp.all(jnp.isfinite(out)))
  assert max_err < 5e-2, f"max abs error vs reference: {max_err}"
  print("KERNEL_OK")
</pallas_src>

<mosaic_0001>
module attributes {stable_mosaic.version = 11 : i64} {
  func.func @_attention_gate_kernel(%arg0: i32, %arg1: i32, %arg2: memref<1x64x256xf32, #tpu.memory_space<vmem>>, %arg3: memref<1x64x256xf32, #tpu.memory_space<vmem>>, %arg4: memref<32x64xbf16, #tpu.memory_space<vmem>>, %arg5: memref<32x64xbf16, #tpu.memory_space<vmem>>, %arg6: memref<32x1xf32, #tpu.memory_space<vmem>>, %arg7: memref<32x1xf32, #tpu.memory_space<vmem>>, %arg8: memref<1xf32, #tpu.memory_space<smem>>, %arg9: memref<1x64x256xf32, #tpu.memory_space<vmem>>) attributes {dimension_semantics = [#tpu.dimension_semantics<parallel>, #tpu.dimension_semantics<parallel>], iteration_bounds = array<i64: 2, 1>, scalar_prefetch = 0 : i64, scratch_operands = 0 : i64, tpu.core_type = #tpu.core_type<tc>, window_params = [{transform_indices = @transform_0, window_bounds = array<i64: 1, 64, 256>}, {transform_indices = @transform_1, window_bounds = array<i64: 1, 64, 256>}, {pipeline_mode = #tpu.pipeline_mode<synchronous>, transform_indices = @transform_2, window_bounds = array<i64: 32, 64>}, {pipeline_mode = #tpu.pipeline_mode<synchronous>, transform_indices = @transform_3, window_bounds = array<i64: 32, 64>}, {pipeline_mode = #tpu.pipeline_mode<synchronous>, transform_indices = @transform_4, window_bounds = array<i64: 32, 1>}, {pipeline_mode = #tpu.pipeline_mode<synchronous>, transform_indices = @transform_5, window_bounds = array<i64: 32, 1>}, {transform_indices = @transform_6, window_bounds = array<i64: 1>}, {transform_indices = @transform_7, window_bounds = array<i64: 1, 64, 256>}]} {
    %c0 = arith.constant 0 : index
    %c0_0 = arith.constant 0 : index
    %c0_1 = arith.constant 0 : index
    %0 = vector.load %arg3[%c0, %c0_0, %c0_1] : memref<1x64x256xf32, #tpu.memory_space<vmem>>, vector<1x64x256xf32>
    %1 = vector.shape_cast %0 : vector<1x64x256xf32> to vector<64x256xf32>
    %c0_2 = arith.constant 0 : index
    %c0_3 = arith.constant 0 : index
    %2 = vector.load %arg4[%c0_2, %c0_3] : memref<32x64xbf16, #tpu.memory_space<vmem>>, vector<32x64xbf16>
    %c0_4 = arith.constant 0 : index
    %c0_5 = arith.constant 0 : index
    %c0_6 = arith.constant 0 : index
    %3 = vector.load %arg2[%c0_4, %c0_5, %c0_6] : memref<1x64x256xf32, #tpu.memory_space<vmem>>, vector<1x64x256xf32>
    %4 = vector.shape_cast %3 : vector<1x64x256xf32> to vector<64x256xf32>
    %5 = arith.truncf %4 : vector<64x256xf32> to vector<64x256xbf16>
    %cst = arith.constant dense<0.000000e+00> : vector<32x256xf32>
    %6 = tpu.matmul %2, %5, %cst {dimension_numbers = #tpu.dot_dimension_numbers<[1], [0], [0], [1], [0, 0, 1, 1], [], []>} : vector<32x64xbf16>, vector<64x256xbf16>, vector<32x256xf32> -> vector<32x256xf32>
    %c0_7 = arith.constant 0 : index
    %c0_8 = arith.constant 0 : index
    %7 = vector.load %arg5[%c0_7, %c0_8] : memref<32x64xbf16, #tpu.memory_space<vmem>>, vector<32x64xbf16>
    %8 = arith.truncf %1 : vector<64x256xf32> to vector<64x256xbf16>
    %cst_9 = arith.constant dense<0.000000e+00> : vector<32x256xf32>
    %9 = tpu.matmul %7, %8, %cst_9 {dimension_numbers = #tpu.dot_dimension_numbers<[1], [0], [0], [1], [0, 0, 1, 1], [], []>} : vector<32x64xbf16>, vector<64x256xbf16>, vector<32x256xf32> -> vector<32x256xf32>
    %10 = arith.addf %6, %9 : vector<32x256xf32>
    %c0_10 = arith.constant 0 : index
    %c0_11 = arith.constant 0 : index
    %11 = vector.load %arg6[%c0_10, %c0_11] : memref<32x1xf32, #tpu.memory_space<vmem>>, vector<32x1xf32>
    %12 = vector.broadcast %11 : vector<32x1xf32> to vector<32x256xf32>
    %13 = arith.addf %10, %12 : vector<32x256xf32>
    %cst_12 = arith.constant 0.000000e+00 : f32
    %14 = vector.broadcast %cst_12 : f32 to vector<32x256xf32>
    %15 = arith.maximumf %13, %14 : vector<32x256xf32>
    %c0_13 = arith.constant 0 : index
    %c0_14 = arith.constant 0 : index
    %16 = vector.load %arg7[%c0_13, %c0_14] : memref<32x1xf32, #tpu.memory_space<vmem>>, vector<32x1xf32>
    %17 = vector.broadcast %16 : vector<32x1xf32> to vector<32x256xf32>
    %18 = arith.mulf %15, %17 : vector<32x256xf32>
    %cst_15 = arith.constant dense<0.000000e+00> : vector<256xf32>
    %19 = vector.multi_reduction <add>, %18, %cst_15 [0] : vector<32x256xf32> to vector<256xf32>
    %20 = vector.shape_cast %19 : vector<256xf32> to vector<1x256xf32>
    %c0_16 = arith.constant 0 : index
    %21 = memref.load %arg8[%c0_16] : memref<1xf32, #tpu.memory_space<smem>>
    %22 = vector.broadcast %21 : f32 to vector<1x256xf32>
    %23 = arith.addf %20, %22 : vector<1x256xf32>
    %24 = arith.negf %23 : vector<1x256xf32>
    %25 = math.exp %24 : vector<1x256xf32>
    %cst_17 = arith.constant 1.000000e+00 : f32
    %26 = vector.broadcast %cst_17 : f32 to vector<1x256xf32>
    %27 = arith.addf %26, %25 : vector<1x256xf32>
    %28 = arith.divf %26, %27 : vector<1x256xf32>
    %29 = vector.broadcast %28 : vector<1x256xf32> to vector<64x256xf32>
    %30 = arith.mulf %1, %29 : vector<64x256xf32>
    %c0_18 = arith.constant 0 : index
    %c0_19 = arith.constant 0 : index
    %c0_20 = arith.constant 0 : index
    %31 = vector.load %arg9[%c0_18, %c0_19, %c0_20] : memref<1x64x256xf32, #tpu.memory_space<vmem>>, vector<1x64x256xf32>
    %32 = vector.shape_cast %31 : vector<1x64x256xf32> to vector<64x256xf32>
    %33 = vector.shape_cast %30 : vector<64x256xf32> to vector<1x64x256xf32>
    tpu.vector_store %arg9[%c0_18, %c0_19, %c0_20], %33 {strides = array<i32>} : memref<1x64x256xf32, #tpu.memory_space<vmem>>, vector<1x64x256xf32>,
    return
  }
  func.func @transform_0(%arg0: i32, %arg1: i32) -> (i32, i32, i32) {
    %c0_i32 = arith.constant 0 : i32
    %c0_i32_0 = arith.constant 0 : i32
    return %arg0, %c0_i32, %arg1 : i32, i32, i32
  }
  func.func @transform_1(%arg0: i32, %arg1: i32) -> (i32, i32, i32) {
    %c0_i32 = arith.constant 0 : i32
    %c0_i32_0 = arith.constant 0 : i32
    return %arg0, %c0_i32, %arg1 : i32, i32, i32
  }
  func.func @transform_2(%arg0: i32, %arg1: i32) -> (i32, i32) {
    %c0_i32 = arith.constant 0 : i32
    %c0_i32_0 = arith.constant 0 : i32
    %c0_i32_1 = arith.constant 0 : i32
    return %c0_i32, %c0_i32_0 : i32, i32
  }
  func.func @transform_3(%arg0: i32, %arg1: i32) -> (i32, i32) {
    %c0_i32 = arith.constant 0 : i32
    %c0_i32_0 = arith.constant 0 : i32
    %c0_i32_1 = arith.constant 0 : i32
    return %c0_i32, %c0_i32_0 : i32, i32
  }
  func.func @transform_4(%arg0: i32, %arg1: i32) -> (i32, i32) {
    %c0_i32 = arith.constant 0 : i32
    %c0_i32_0 = arith.constant 0 : i32
    %c0_i32_1 = arith.constant 0 : i32
    return %c0_i32, %c0_i32_0 : i32, i32
  }
  func.func @transform_5(%arg0: i32, %arg1: i32) -> (i32, i32) {
    %c0_i32 = arith.constant 0 : i32
    %c0_i32_0 = arith.constant 0 : i32
    %c0_i32_1 = arith.constant 0 : i32
    return %c0_i32, %c0_i32_0 : i32, i32
  }
  func.func @transform_6(%arg0: i32, %arg1: i32) -> i32 {
    %c0_i32 = arith.constant 0 : i32
    %c0_i32_0 = arith.constant 0 : i32
    return %c0_i32 : i32
  }
  func.func @transform_7(%arg0: i32, %arg1: i32) -> (i32, i32, i32) {
    %c0_i32 = arith.constant 0 : i32
    %c0_i32_0 = arith.constant 0 : i32
    return %arg0, %c0_i32, %arg1 : i32, i32, i32
  }
}

</mosaic_0001>

<bundles_post_ra>
// kernel: attention_block.1
= control target key start
LH: loop header
LB: loop body
LE: loop exit
PB: predicated region body
PF: predicated region fallthrough
CT: control target
= control target key end

     0   :  { %s935_s26 = smov 0   ;;  %s937_s27 = smov 0   ;;  %s1136_s0 = inlined_call_operand.vmem [shape: f32[2,64,256], index: 0, kind: input, shape index: {}]   ;;  %s1137_s1 = inlined_call_operand.vmem [shape: f32[2,64,256], index: 1, kind: input, shape index: {}]   ;;  %s1138_s2 = inlined_call_operand.vmem [shape: bf16[32,64], index: 2, kind: input, shape index: {}]   ;;  %s1139_s3 = inlined_call_operand.vmem [shape: bf16[32,64], index: 3, kind: input, shape index: {}]   ;;  %s1140_s4 = inlined_call_operand.vmem [shape: f32[32,1], index: 4, kind: input, shape index: {}]   ;;  %s1141_s5 = inlined_call_operand.vmem [shape: f32[32,1], index: 5, kind: input, shape index: {}]   ;;  %s1142_s6 = inlined_call_operand.<no memory space> [shape: f32[1], index: 6, kind: input, shape index: {}]   ;;  %s1143_s7 = inlined_call_operand.vmem [shape: f32[2,64,256], index: 7, kind: output, shape index: {}]  }
   0x1   :  { %12 = sst [smem:[#allocation2]] %s1142_s6  ;;  %s939_s28 = smov 0  }
   0x2 LB: > { %s30_s6 = sadd.s32 1, %s885_s27  ;;  %p798_p0 = scmp.ge.s32.totalorder %s889_s28, 1  ;;  %s889_s28 = sphi %s939_s28, %s18_s28   ;;  %s885_s27 = sphi %s937_s27, %s1145_s27   ;;  %s881_s26 = sphi %s935_s26, %s1144_s26  }
   0x3   : > { %p32_p1 = scmp.ge.s32.totalorder %s30_s6, 2  ;;  %p276_p2 = scmp.lt.s32.totalorder %s889_s28, 3 }
   0x5   : > { %s1147_s6 = smov (%p32_p1, %s30_s6), 0  ;;  %p277_p3 = pnand %p798_p0, %p276_p2 }
   0x6   : > { %p326_p4 = scmp.lt.s32.totalorder (!%p277_p3), %s881_s26, 1  ;;  %v891_v0 = vmov (!%p277_p3), 0   ;;  %v551_v1 = vld [vmem:[%s1140_s4] sm:$0xff] (!%p277_p3)  ;;  %v553_v2 = vld [vmem:[%s1140_s4 + $0x10] sm:$0xff] (!%p277_p3)  ;;  %v552_v3 = vld [vmem:[%s1140_s4 + $0x8] sm:$0xff] (!%p277_p3)  ;;  %vm422_vm0 = vcmask (!%p277_p3), 523264  }
   0x7   : > { %280 = sbr.rel (%p277_p3) target bundleno = 319 (0x13f), region = 48  ;;  %461 = vmatprep.mubr.bf16.mxu1 (!%p277_p3), %v891_v0  ;;  %530 = vmatprep.mubr.bf16.mxu0 (!%p277_p3), %v891_v0  ;;  %v554_v7 = vld [vmem:[%s1140_s4 + $0x18] sm:$0xff] (!%p277_p3)  ;;  %v591_v17 = vld [vmem:[%s1141_s5] sm:$0xff] (!%p277_p3)  ;;  %v592_v52 = vld [vmem:[%s1141_s5 + $0x8] sm:$0xff] (!%p277_p3)  ;;  %s641_s17 = sld [smem:[#allocation2]] (!%p277_p3) }
   0x8   : > { %853 = vset.pattern.permute.xlu0 (!%p277_p3), %v891_v0  ;;  %854 = vset.pattern.permute.xlu1 (!%p277_p3), %v891_v0  ;;  %v593_v53 = vld [vmem:[%s1141_s5 + $0x10] sm:$0xff] (!%p277_p3)  ;;  %v594_v55 = vld [vmem:[%s1141_s5 + $0x18] sm:$0xff] (!%p277_p3)  ;;  %v855_v57 = vld [vmem:[%s1139_s3] sm:$0xff] (!%p277_p3)  }
   0x9   : > { %557 = vperm.xlu0 (!%p277_p3), %853, %v551_v1   ;;  %567 = vperm.xlu1 (!%p277_p3), %854, %v553_v2   ;;  %v856_v58 = vld [vmem:[%s1138_s2] sm:$0xff] (!%p277_p3)   ;;  %v857_v59 = vld [vmem:[%s1139_s3 + $0x8] sm:$0xff] (!%p277_p3)  }
   0xa   : > { %v858_v60 = vld [vmem:[%s1138_s2 + $0x8] sm:$0xff] (!%p277_p3)  }
   0xd   : > { %562 = vperm.xlu0 (!%p277_p3), %853, %v552_v3   ;;  %572 = vperm.xlu1 (!%p277_p3), %854, %v554_v7  }
   0xe   : > { %s1149_s26 = smov (!%p326_p4, %s881_s26), 1 }
   0xf   : > { %s957_s29 = sshll.u32 %s1149_s26, 7 }
  0x10   : > { %s969_s13 = scalar_lea.vmem %s1137_s1, %s957_s29  ;;  %s984_s18 = scalar_lea.vmem %s1136_s0, %s957_s29 }
  0x11   : > { %v975_v4 = vld [vmem:[%s969_s13 + $0x8] sm:$0xff]  ;;  %v978_v5 = vld [vmem:[%s969_s13 + $0x18] sm:$0xff]  ;;  %v987_v6 = vld [vmem:[%s969_s13] sm:$0xff]  ;;  %597 = vperm.xlu0 %853, %v591_v17   ;;  %602 = vperm.xlu1 %854, %v592_v52   ;;  %s1093_s20 = scalar_lea.vmem %s1143_s7, %s957_s29 }
  0x12   : > { %v405_v8 = vpack.c.bf16 %v978_v5, %v975_v4  ;;  %v377_v9 = vld [vmem:[%s984_s18 + $0x8] sm:$0xff]  ;;  %v379_v10 = vld [vmem:[%s984_s18 + $0x18] sm:$0xff]  ;;  %v997_v11 = vld [vmem:[%s969_s13 + $0x10] sm:$0xff] }
  0x13   : > { %v393_v12 = vpack.c.bf16 %v379_v10, %v377_v9  ;;  %v404_v13 = vpack.c.bf16 %v997_v11, %v987_v6  ;;  %v376_v14 = vld [vmem:[%s984_s18] sm:$0xff]  ;;  %v378_v15 = vld [vmem:[%s984_s18 + $0x10] sm:$0xff]  ;;  %v1004_v16 = vld [vmem:[%s969_s13 + $0x28] sm:$0xff] }
  0x14   : > { %429 = vmatprep.subr.bf16.mxu1 %v405_v8  ;;  %v392_v18 = vpack.c.bf16 %v378_v15, %v376_v14  ;;  %v1010_v19 = vld [vmem:[%s969_s13 + $0x38] sm:$0xff]  ;;  %v381_v20 = vld [vmem:[%s984_s18 + $0x28] sm:$0xff]  ;;  %v1017_v24 = vld [vmem:[%s969_s13 + $0x20] sm:$0xff] }
  0x15   : > { %v383_v21 = vld [vmem:[%s984_s18 + $0x38] sm:$0xff]  ;;  %498 = vmatprep.subr.bf16.mxu0 %v393_v12  ;;  %430 = vmatpush1.bf16.msra.mxu1 %v404_v13  ;;  %v407_v22 = vpack.c.bf16 %v1010_v19, %v1004_v16  ;;  %v1020_v25 = vld [vmem:[%s969_s13 + $0x30] sm:$0xff]  ;;  %v380_v26 = vld [vmem:[%s984_s18 + $0x20] sm:$0xff] }
  0x16   : > { %v395_v23 = vpack.c.bf16 %v383_v21, %v381_v20  ;;  %499 = vmatpush1.bf16.msra.mxu0 %v392_v18  ;;  %v406_v27 = vpack.c.bf16 %v1020_v25, %v1017_v24  ;;  %v382_v28 = vld [vmem:[%s984_s18 + $0x30] sm:$0xff]  ;;  %v1027_v29 = vld [vmem:[%s969_s13 + $0x48] sm:$0xff]  ;;  %v1030_v30 = vld [vmem:[%s969_s13 + $0x58] sm:$0xff]  ;;  %607 = vperm.xlu0 %853, %v593_v53  }
  0x17   : > { %431 = vmatprep.subr.bf16.mxu1 %v407_v22  ;;  %v394_v31 = vpack.c.bf16 %v382_v28, %v380_v26  ;;  %v409_v32 = vpack.c.bf16 %v1030_v30, %v1027_v29  ;;  %v385_v33 = vld [vmem:[%s984_s18 + $0x48] sm:$0xff]  ;;  %v387_v34 = vld [vmem:[%s984_s18 + $0x58] sm:$0xff]  ;;  %v1037_v35 = vld [vmem:[%s969_s13 + $0x40] sm:$0xff]  ;;  %612 = vperm.xlu1 %854, %v594_v55  }
  0x18   : > { %500 = vmatprep.subr.bf16.mxu0 %v395_v23  ;;  %v397_v36 = vpack.c.bf16 %v387_v34, %v385_v33  ;;  %v1040_v37 = vld [vmem:[%s969_s13 + $0x50] sm:$0xff]  ;;  %v384_v38 = vld [vmem:[%s984_s18 + $0x40] sm:$0xff]  ;;  %v1047_v41 = vld [vmem:[%s969_s13 + $0x68] sm:$0xff] }
  0x19   : > { %v386_v39 = vld [vmem:[%s984_s18 + $0x50] sm:$0xff]  ;;  %432 = vmatpush1.bf16.msra.mxu1 %v406_v27  ;;  %v408_v40 = vpack.c.bf16 %v1040_v37, %v1037_v35  ;;  %v1050_v42 = vld [vmem:[%s969_s13 + $0x78] sm:$0xff]  ;;  %v389_v43 = vld [vmem:[%s984_s18 + $0x68] sm:$0xff] }
  0x1a   : > { %501 = vmatpush1.bf16.msra.mxu0 %v394_v31  ;;  %433 = vmatprep.subr.bf16.mxu1 %v409_v32  ;;  %v396_v44 = vpack.c.bf16 %v386_v39, %v384_v38  ;;  %v411_v45 = vpack.c.bf16 %v1050_v42, %v1047_v41  ;;  %v391_v46 = vld [vmem:[%s984_s18 + $0x78] sm:$0xff]  ;;  %v1057_v47 = vld [vmem:[%s969_s13 + $0x60] sm:$0xff]  ;;  %v1060_v48 = vld [vmem:[%s969_s13 + $0x70] sm:$0xff] }
  0x1b   : > { %502 = vmatprep.subr.bf16.mxu0 %v397_v36  ;;  %v399_v49 = vpack.c.bf16 %v391_v46, %v389_v43  ;;  %v388_v50 = vld [vmem:[%s984_s18 + $0x60] sm:$0xff]  ;;  %v390_v51 = vld [vmem:[%s984_s18 + $0x70] sm:$0xff]  ;;  %v410_v54 = vpack.c.bf16 %v1060_v48, %v1057_v47 }
  0x1c   : > { %v398_v56 = vpack.c.bf16 %v390_v51, %v388_v50 }
  0x1d   : > { %434 = vmatpush1.bf16.msra.mxu1 %v408_v40 }
  0x1e   : > { %503 = vmatpush1.bf16.msra.mxu0 %v396_v44  ;;  %435 = vmatprep.subr.bf16.mxu1 %v411_v45 }
  0x1f   : > { %504 = vmatprep.subr.bf16.mxu0 %v399_v49 }
  0x21   : > { %436 = vmatpush1.bf16.msra.mxu1 %v410_v54 }
  0x22   : > { %505 = vmatpush1.bf16.msra.mxu0 %v398_v56 }
  0x24   : > { %807 = vmatmul.mubr.msk.bf16.vlgmr.msra.gmra.mrb[0].mxu1 %vm422_vm0, %v855_v57 }
  0x25   : > { %811 = vmatmul.mubr.msk.bf16.vlgmr.msra.gmra.mrb[0].mxu0 %vm422_vm0, %v856_v58  ;;  %471 = vmatprep.mubr.bf16.mxu1 %v891_v0 }
  0x26   : > { %540 = vmatprep.mubr.bf16.mxu0 %v891_v0 }
  0x2c   : > { %808 = vmatmul.mubr.msk.bf16.gmra.mrb[4].mxu1 %vm422_vm0, %v857_v59 }
  0x2d   : > { %812 = vmatmul.mubr.msk.bf16.gmra.mrb[4].mxu0 %vm422_vm0, %v858_v60 }
  0x88   : > { %v558_v61 = vpop.permute.xlu0 %557  ;;  %v568_v62 = vpop.permute.xlu1 %567 }
  0x8c   : > { %v563_v63 = vpop.permute.xlu0 %562  ;;  %v573_v1 = vpop.permute.xlu1 %572 }
  0x90   : > { %v598_v23 = vpop.permute.xlu0 %597  ;;  %v603_v28 = vpop.permute.xlu1 %602 }
  0xf7   : > { %v463_v2 = vpop.f32.mrb[0].mxu1 }
  0xf8   : > { %v532_v3 = vpop.f32.mrb[0].mxu0  ;;  %v465_v7 = vpop.f32.mrb[1].mxu1 }
  0xf9   : > { %v533_v8 = vadd.f32 %v532_v3, %v463_v2  ;;  %v534_v9 = vpop.f32.mrb[1].mxu0  ;;  %v467_v0 = vpop.f32.mrb[2].mxu1 }
  0xfa   : > { %v535_v10 = vadd.f32 %v534_v9, %v465_v7  ;;  %v536_v12 = vpop.f32.mrb[2].mxu0  ;;  %v469_v13 = vpop.f32.mrb[3].mxu1 }
  0xfb   : > { %v575_v14 = vadd.f32 %v558_v61, %v533_v8  ;;  %v537_v15 = vadd.f32 %v536_v12, %v467_v0  ;;  %v538_v17 = vpop.f32.mrb[3].mxu0  ;;  %v613_v8 = vpop.permute.xlu1 %612 }
  0xfc   : > { %v576_v18 = vadd.f32 %v558_v61, %v535_v10  ;;  %v539_v20 = vadd.f32 %v538_v17, %v469_v13  ;;  %v608_v61 = vpop.permute.xlu0 %607 }
  0xfd   : > { %v583_v21 = vmax.f32 %v575_v14, 0.0  ;;  %v577_v22 = vadd.f32 %v563_v63, %v537_v15 }
  0xfe   : > { %v584_v26 = vmax.f32 %v576_v18, 0.0  ;;  %v578_v27 = vadd.f32 %v563_v63, %v539_v20 }
  0xff   : > { %v585_v31 = vmax.f32 %v577_v22, 0.0  ;;  %v473_v32 = vpop.f32.mrb[4].mxu1  ;;  %v615_v38 = vmul.f32 %v598_v23, %v583_v21 }
 0x100   : > { %v586_v33 = vmax.f32 %v578_v27, 0.0  ;;  %v542_v34 = vpop.f32.mrb[4].mxu0  ;;  %v475_v36 = vpop.f32.mrb[5].mxu1  ;;  %v616_v45 = vmul.f32 %v598_v23, %v584_v26 }
 0x101   : > { %v617_v39 = vmul.f32 %v603_v28, %v585_v31  ;;  %v543_v40 = vadd.f32 %v542_v34, %v473_v32  ;;  %v544_v43 = vpop.f32.mrb[5].mxu0  ;;  %v477_v44 = vpop.f32.mrb[6].mxu1 }
 0x102   : > { %v618_v46 = vmul.f32 %v603_v28, %v586_v33  ;;  %v545_v49 = vadd.f32 %v544_v43, %v475_v36  ;;  %v546_v50 = vpop.f32.mrb[6].mxu0  ;;  %v479_v51 = vpop.f32.mrb[7].mxu1  ;;  %v642_v28 = vstv %s641_s17 }
 0x103   : > { %v623_v52 = vadd.f32 %v617_v39, %v615_v38  ;;  %v579_v53 = vadd.f32 %v568_v62, %v543_v40  ;;  %v547_v54 = vadd.f32 %v546_v50, %v477_v44  ;;  %v548_v55 = vpop.f32.mrb[7].mxu0 }
 0x104   : > { %v632_v56 = vadd.f32 %v618_v46, %v616_v45  ;;  %v580_v57 = vadd.f32 %v568_v62, %v545_v49  ;;  %v549_v58 = vadd.f32 %v548_v55, %v479_v51 }
 0x105   : > { %v587_v59 = vmax.f32 %v579_v53, 0.0  ;;  %v581_v60 = vadd.f32 %v573_v1, %v547_v54 }
 0x106   : > { %v588_v63 = vmax.f32 %v580_v57, 0.0  ;;  %v582_v2 = vadd.f32 %v573_v1, %v549_v58 }
 0x107   : > { %v619_v3 = vmul.f32 %v608_v61, %v587_v59  ;;  %v589_v7 = vmax.f32 %v581_v60, 0.0 }
 0x108   : > { %v620_v9 = vmul.f32 %v608_v61, %v588_v63  ;;  %v590_v0 = vmax.f32 %v582_v2, 0.0 }
 0x109   : > { %v624_v10 = vadd.f32 %v623_v52, %v619_v3  ;;  %v621_v12 = vmul.f32 %v613_v8, %v589_v7 }
 0x10a   : > { %v633_v13 = vadd.f32 %v632_v56, %v620_v9  ;;  %v622_v14 = vmul.f32 %v613_v8, %v590_v0 }
 0x10b   : > { %v625_v15 = vadd.f32 %v624_v10, %v621_v12 }
 0x10c   : > { %v634_v17 = vadd.f32 %v633_v13, %v622_v14 }
 0x10d   : > { %v626_v18 = vrot.slane %v625_v15, 4 }
 0x10e   : > { %v635_v62 = vrot.slane %v634_v17, 4 }
 0x10f   : > { %v627_v20 = vadd.f32 %v626_v18, %v625_v15 }
 0x110   : > { %v636_v21 = vadd.f32 %v635_v62, %v634_v17 }
 0x111   : > { %v628_v22 = vrot.slane %v627_v20, 2 }
 0x112   : > { %v637_v23 = vrot.slane %v636_v21, 2 }
 0x113   : > { %v629_v26 = vadd.f32 %v628_v22, %v627_v20 }
 0x114   : > { %v638_v1 = vadd.f32 %v637_v23, %v636_v21 }
 0x115   : > { %v630_v27 = vrot.slane %v629_v26, 1 }
 0x116   : > { %v639_v31 = vrot.slane %v638_v1, 1 }
 0x117   : > { %v631_v32 = vadd.f32 %v630_v27, %v629_v26 }
 0x118   : > { %v640_v33 = vadd.f32 %v639_v31, %v638_v1 }
 0x119   : > { %v643_v34 = vadd.f32 %v642_v28, %v631_v32 }
 0x11a   : > { %v644_v36 = vadd.f32 %v642_v28, %v640_v33 }
 0x11b   : > { %v813_v38 = vmul.f32 -1.442695, %v643_v34 }
 0x11c   : > { %v814_v39 = vmul.f32 -1.442695, %v644_v36 }
 0x11d   : > { %859 = vpow2.f32 %v813_v38 }
 0x11e   : > { %861 = vpow2.f32 %v814_v39 }
 0x127   : > { %v860_v40 = vpop.eup %859 }
 0x128   : > { %v862_v43 = vpop.eup %861  ;;  %v651_v44 = vadd.f32 1.0, %v860_v40 }
 0x129   : > { %v652_v45 = vadd.f32 1.0, %v862_v43 }
 0x12a   : > { %863 = vrcp.f32 %v651_v44 }
 0x12b   : > { %865 = vrcp.f32 %v652_v45 }
 0x134   : > { %v864_v46 = vpop.eup %863 }
 0x135   : > { %v866_v49 = vpop.eup %865  ;;  %v657_v50 = vmul.f32 %v864_v46, %v987_v6  ;;  %v659_v51 = vmul.f32 %v864_v46, %v997_v11  ;;  %v661_v52 = vmul.f32 %v864_v46, %v1017_v24  ;;  %v663_v53 = vmul.f32 %v864_v46, %v1020_v25 }
 0x136   : > { %v665_v54 = vmul.f32 %v864_v46, %v1037_v35  ;;  %v667_v55 = vmul.f32 %v864_v46, %v1040_v37  ;;  %v669_v56 = vmul.f32 %v864_v46, %v1057_v47  ;;  %v671_v57 = vmul.f32 %v864_v46, %v1060_v48 }
 0x137   : > { %673 = vst [vmem:[%s1093_s20] sm:$0xff] %v657_v50  ;;  %675 = vst [vmem:[%s1093_s20 + $0x10] sm:$0xff] %v659_v51  ;;  %v658_v6 = vmul.f32 %v866_v49, %v975_v4  ;;  %v660_v11 = vmul.f32 %v866_v49, %v978_v5  ;;  %v662_v24 = vmul.f32 %v866_v49, %v1004_v16 }
 0x138   : > { %677 = vst [vmem:[%s1093_s20 + $0x20] sm:$0xff] %v661_v52  ;;  %679 = vst [vmem:[%s1093_s20 + $0x30] sm:$0xff] %v663_v53  ;;  %v664_v25 = vmul.f32 %v866_v49, %v1010_v19  ;;  %v666_v35 = vmul.f32 %v866_v49, %v1027_v29  ;;  %v668_v37 = vmul.f32 %v866_v49, %v1030_v30 }
 0x139   : > { %681 = vst [vmem:[%s1093_s20 + $0x40] sm:$0xff] %v665_v54  ;;  %683 = vst [vmem:[%s1093_s20 + $0x50] sm:$0xff] %v667_v55  ;;  %v670_v4 = vmul.f32 %v866_v49, %v1047_v41  ;;  %v672_v47 = vmul.f32 %v866_v49, %v1050_v42 }
 0x13a   : > { %685 = vst [vmem:[%s1093_s20 + $0x60] sm:$0xff] %v669_v56  ;;  %687 = vst [vmem:[%s1093_s20 + $0x70] sm:$0xff] %v671_v57 }
 0x13b   : > { %674 = vst [vmem:[%s1093_s20 + $0x8] sm:$0xff] %v658_v6  ;;  %676 = vst [vmem:[%s1093_s20 + $0x18] sm:$0xff] %v660_v11 }
 0x13c   : > { %678 = vst [vmem:[%s1093_s20 + $0x28] sm:$0xff] %v662_v24  ;;  %680 = vst [vmem:[%s1093_s20 + $0x38] sm:$0xff] %v664_v25 }
 0x13d   : > { %682 = vst [vmem:[%s1093_s20 + $0x48] sm:$0xff] %v666_v35  ;;  %684 = vst [vmem:[%s1093_s20 + $0x58] sm:$0xff] %v668_v37 }
 0x13e   : > { %686 = vst [vmem:[%s1093_s20 + $0x68] sm:$0xff] %v670_v4  ;;  %688 = vst [vmem:[%s1093_s20 + $0x78] sm:$0xff] %v672_v47 }
 0x13f PF: > { %s18_s28 = sadd.s32 1, %s889_s28   ;;  %s1144_s26 = smov %s885_s27 }
 0x140   : > { %p15_p5 = scmp.ge.s32.totalorder %s18_s28, 4   ;;  %s1145_s27 = smov %s1147_s6 }
 0x142   :  { %17 = sbr.rel (!%p15_p5) target bundleno = 2 (0x2), region = 81 }

</bundles_post_ra>
